<compile_context>
chip_gen: v5e
topology: v5e:2x2
jax: 0.10.0
libtpu: 0.0.40
codegen_flags: <defaults>
</compile_context>

<pallas_src>
import jax
import jax.numpy as jnp
from jax.experimental import pallas as pl
from jax.experimental.pallas import tpu as pltpu

_EPS_NORM = 1e-6     # F.normalize eps
_EPS_BLEND = 1e-10   # softmax_rgb_blend eps
_EPS_LOG = 1e-30
_LANE = 128


def _fast_recip(x):
    # EUP approx reciprocal + one Newton-Raphson step (~f32 accurate, no VALU divide).
    r = pl.reciprocal(x, approx=True)
    return r * (2.0 - x * r)


def _blend_kernel(params_ref, geo_ref, tex_ref, out_ref):
    """Phong color combine + online softmax_rgb_blend over the K faces.

    geo_ref: (1, 4K, TR, 128) f32 slab [av | spec_pow | prob | z_inv]
    tex_ref: (1, 3K, TR, 128) bf16 texels (k-major, c-minor)
    out_ref: (1, 4,  TR, 128) f32 RGBA
    """
    K = tex_ref.shape[1] // 3
    f32 = jnp.float32
    b = pl.program_id(0)
    p = lambda i: params_ref[b, i]

    amb_c = (p(0), p(1), p(2))       # material_ambient * light_ambient
    dif_c = (p(3), p(4), p(5))       # material_diffuse * light_diffuse
    spc_c = (p(6), p(7), p(8))       # material_specular * light_specular
    bg = (p(9), p(10), p(11))        # background color
    inv_gamma = 1.0 / p(12)          # scalar-unit divide, once per grid step

    shp = (geo_ref.shape[2], geo_ref.shape[3])

    # online softmax_rgb_blend accumulators (live set independent of K)
    z_max = jnp.full(shp, _EPS_BLEND, f32)
    denom = jnp.zeros(shp, f32)
    num = [jnp.zeros(shp, f32) for _ in range(3)]
    one_m_alpha = jnp.ones(shp, f32)          # prod_k (1 - prob_k)

    for k in range(K):
        av = geo_ref[0, k]                    # diffuse cosine * shadow visibility
        spec = geo_ref[0, K + k]              # specular power term
        prob = geo_ref[0, 2 * K + k]          # mask * sigmoid(-dists/sigma)
        z_inv = geo_ref[0, 3 * K + k]         # (zfar - zbuf)/(zfar - znear) * mask

        # online blend update (running z_max with rescaling of accumulators)
        new_zmax = jnp.maximum(z_max, z_inv)
        scale = jnp.exp((z_max - new_zmax) * inv_gamma)
        w = prob * jnp.exp((z_inv - new_zmax) * inv_gamma)
        denom = denom * scale + w
        one_m_alpha = one_m_alpha * (1.0 - prob)
        for c in range(3):
            tex = tex_ref[0, 3 * k + c].astype(f32)
            col = (amb_c[c] + dif_c[c] * av) * tex + spc_c[c] * spec
            num[c] = num[c] * scale + w * col
        z_max = new_zmax

    delta = jnp.maximum(jnp.exp((_EPS_BLEND - z_max) * inv_gamma), _EPS_BLEND)
    inv_denom = _fast_recip(denom + delta)
    for c in range(3):
        out_ref[0, c] = (num[c] + delta * bg[c]) * inv_denom
    out_ref[0, 3] = 1.0 - one_m_alpha


def soft_phong_shader_shadow(verts, faces, verts_normals, pix_to_face, bary_coords,
                             zbuf, dists, texels, vis_map, params):
    """Full forward: phong_shading_with_shadow + softmax_rgb_blend."""
    N, H, W, K = pix_to_face.shape
    f32, bf16 = jnp.float32, jnp.bfloat16
    P = H * W
    params = params.astype(f32)

    light_loc = params[:, 0:3]
    light_amb = params[:, 3:6]
    light_dif = params[:, 6:9]
    light_spc = params[:, 9:12]
    cam_pos = params[:, 12:15]
    mat_amb = params[:, 15:18]
    mat_dif = params[:, 18:21]
    mat_spc = params[:, 21:24]
    shininess = params[:, 24]
    sigma = params[:, 25]
    gamma = params[:, 26]
    bg = params[:, 27:30]
    znear = params[:, 30]
    zfar = params[:, 31]

    # ---- wrapper glue (one XLA fusion over the fragment stream): packed-mesh
    # gather + barycentric interpolation + lighting geometry scalars. ----
    mask_b = pix_to_face >= 0
    maskf = mask_b.astype(f32)
    safe_idx = jnp.where(mask_b, pix_to_face, 0)
    fv = verts[faces][safe_idx]                        # (N,H,W,K,3,3)
    fn = verts_normals[faces][safe_idx]
    bw = bary_coords[..., None].astype(f32)
    pix_coords = (bw * fv).sum(-2)                     # (N,H,W,K,3)
    pix_norms = (bw * fn).sum(-2)

    def normalize(v):                                  # F.normalize semantics
        n = jnp.sqrt((v * v).sum(-1, keepdims=True))
        return v / jnp.maximum(n, _EPS_NORM)

    b5 = lambda x: x[:, None, None, None, :]
    nrm = normalize(pix_norms)
    ldir = normalize(b5(light_loc) - pix_coords)       # direction to point light
    cos = (nrm * ldir).sum(-1)                         # (N,H,W,K)
    ang = jnp.maximum(cos, 0.0)
    vdir = normalize(b5(cam_pos) - pix_coords)         # view direction
    refl = 2.0 * cos[..., None] * nrm - ldir           # reflected light direction
    a_s = jnp.where(cos > 0.0, jnp.maximum((vdir * refl).sum(-1), 0.0), 0.0)
    shin4 = shininess[:, None, None, None]
    spec_pow = jnp.where(
        a_s > 0.0, jnp.exp(shin4 * jnp.log(jnp.maximum(a_s, _EPS_LOG))), 0.0)
    av = ang * vis_map                                 # vis_map (N,H,W,1) bcasts over K

    sig4 = sigma[:, None, None, None]
    zf4 = zfar[:, None, None, None]
    zn4 = znear[:, None, None, None]
    prob = maskf / (1.0 + jnp.exp(dists / sig4))       # exact sigmoid, f32
    z_inv = (zf4 - zbuf) / (zf4 - zn4) * maskf         # f32

    geo = jnp.concatenate([av, spec_pow, prob, z_inv], axis=-1)    # (N,H,W,4K) f32
    tex = texels.reshape(N, H, W, 3 * K)                           # k-major, c-minor

    # ---- lane-dense (N, C, R, 128) layout; VMEM-budgeted spatial tile ----
    R = pl.cdiv(P, _LANE)
    try:
        vmem_cap = pltpu.get_tpu_info().vmem_capacity_bytes
    except Exception:
        vmem_cap = 64 * 1024 * 1024
    if vmem_cap >= 96 * 1024 * 1024:        # v5e / v6e: 128 MiB physical VMEM
        io_target = 28 * 1024 * 1024
        vmem_limit = 64 * 1024 * 1024
    else:                                   # v7x: 64 MiB per TensorCore
        io_target = 20 * 1024 * 1024
        vmem_limit = 48 * 1024 * 1024

    # double-buffered I/O bytes per row of 128 pixels:
    #   geo f32 4K ch + tex bf16 3K ch + out f32 4 ch, all x2 buffers
    io_row = 2 * (4 * K * 4 + 3 * K * 2 + 4 * 4) * _LANE
    tr_cap = io_target // io_row
    tr_cap = min(2048, max(16, (tr_cap // 16) * 16))   # bf16 tiles are (16,128)

    if R <= tr_cap:
        TR, R_pad = R, R
    else:
        TR = tr_cap
        R_pad = pl.cdiv(R, TR) * TR

    # v7x megacore: make sure both TensorCores get at least one grid step.
    if N * (R_pad // TR) < 2 and R >= 32:
        TR = ((pl.cdiv(R, 2) + 15) // 16) * 16
        R_pad = pl.cdiv(R, TR) * TR
    P_pad = R_pad * _LANE

    def to_cp(x, C, dtype):
        x = x.reshape(N, P, C).astype(dtype)
        if P_pad != P:
            x = jnp.pad(x, ((0, 0), (0, P_pad - P), (0, 0)))
        return jnp.transpose(x, (0, 2, 1)).reshape(N, C, R_pad, _LANE)

    geo_cp = to_cp(geo, 4 * K, f32)        # one transpose pass per dtype slab
    tex_cp = to_cp(tex, 3 * K, bf16)

    # compact per-batch scalar table for the kernel (SMEM)
    kparams = jnp.concatenate(
        [mat_amb * light_amb, mat_dif * light_dif, mat_spc * light_spc,
         bg, gamma[:, None]], axis=1)                   # (N, 13)

    def vspec(c):
        return pl.BlockSpec((1, c, TR, _LANE), lambda b, r: (b, 0, r, 0))

    out = pl.pallas_call(
        _blend_kernel,
        out_shape=jax.ShapeDtypeStruct((N, 4, R_pad, _LANE), f32),
        grid=(N, R_pad // TR),
        in_specs=[
            pl.BlockSpec(memory_space=pltpu.MemorySpace.SMEM),  # (N, 13) scalars
            vspec(4 * K),   # f32 geometry/blend slab
            vspec(3 * K),   # bf16 texels
        ],
        out_specs=vspec(4),
        compiler_params=pltpu.CompilerParams(
            dimension_semantics=("parallel", "parallel"),
            vmem_limit_bytes=vmem_limit),
    )(kparams, geo_cp, tex_cp)

    out = out.reshape(N, 4, P_pad)[:, :, :P].reshape(N, 4, H, W)
    return jnp.transpose(out, (0, 2, 3, 1))            # (N, H, W, 4)


def _reference(verts, faces, verts_normals, pix_to_face, bary, zbuf, dists, texels,
               vis_map, light_loc, light_amb, light_dif, light_spc, cam_pos,
               mat_amb, mat_dif, mat_spc, shininess, sigma, gamma, bg, znear, zfar):
    """Pure-JAX mirror of the PyTorch semantics, used as a correctness check."""
    f32 = jnp.float32
    mask = pix_to_face >= 0
    safe_idx = jnp.where(mask, pix_to_face, 0)
    fv = verts[faces][safe_idx]                        # (N,H,W,K,3,3)
    fn = verts_normals[faces][safe_idx]
    pix_coords = jnp.where(mask[..., None], (bary[..., None] * fv).sum(-2), 0.0)
    pix_norms = jnp.where(mask[..., None], (bary[..., None] * fn).sum(-2), 0.0)

    def normalize(v):
        n = jnp.sqrt((v * v).sum(-1, keepdims=True))
        return v / jnp.maximum(n, _EPS_NORM)

    bcast = lambda x: x[:, None, None, None, :]
    nrm = normalize(pix_norms)
    ldir = normalize(bcast(light_loc) - pix_coords)
    cos = (nrm * ldir).sum(-1)
    ang = jnp.maximum(cos, 0.0)
    light_diffuse = bcast(light_dif) * ang[..., None]

    vdir = normalize(bcast(cam_pos) - pix_coords)
    refl = -ldir + 2.0 * cos[..., None] * nrm
    a_s = jnp.maximum((vdir * refl).sum(-1), 0.0) * (cos > 0)
    spec_pow = jnp.where(
        a_s > 0.0,
        jnp.exp(shininess[:, None, None, None] * jnp.log(jnp.maximum(a_s, _EPS_LOG))),
        0.0)
    light_spec = bcast(light_spc) * spec_pow[..., None]

    # NOTE: materials treated as per-batch (N,3) scales (PyTorch3D default is (1,3)).
    ambient = bcast(mat_amb * light_amb)
    diffuse = bcast(mat_dif) * light_diffuse
    specular = bcast(mat_spc) * light_spec
    vis5 = vis_map[:, :, :, None, :]                   # == unsqueeze(-2).repeat over K
    colors = (ambient + diffuse * vis5) * texels + specular

    maskf = mask.astype(f32)
    prob = maskf / (1.0 + jnp.exp(dists / sigma))
    alpha = jnp.prod(1.0 - prob, axis=-1)
    z_inv = (zfar - zbuf) / (zfar - znear) * maskf
    z_max = jnp.maximum(z_inv.max(-1, keepdims=True), _EPS_BLEND)
    w = prob * jnp.exp((z_inv - z_max) / gamma)
    delta = jnp.maximum(jnp.exp((_EPS_BLEND - z_max) / gamma), _EPS_BLEND)
    denom = w.sum(-1, keepdims=True) + delta
    wcol = (w[..., None] * colors).sum(-2)
    rgb = (wcol + delta * bg) / denom
    return jnp.concatenate([rgb, (1.0 - alpha)[..., None]], axis=-1)


if __name__ == "__main__":
    key = jax.random.PRNGKey(0)
    N, H, W, K = 2, 16, 16, 4
    V, F = 32, 24
    f32 = jnp.float32
    ks = jax.random.split(key, 20)

    # synthetic mesh + rasterizer Fragments
    verts = jax.random.normal(ks[0], (V, 3), f32)
    faces = jax.random.randint(ks[1], (F, 3), 0, V)
    vn = jax.random.normal(ks[2], (V, 3), f32)
    verts_normals = vn / jnp.linalg.norm(vn, axis=-1, keepdims=True)

    pix_to_face = jax.random.randint(ks[3], (N, H, W, K), -1, F)   # -1 = background
    bary_raw = jax.random.uniform(ks[4], (N, H, W, K, 3), f32, 0.05, 1.0)
    bary_coords = bary_raw / bary_raw.sum(-1, keepdims=True)
    zbuf = jax.random.uniform(ks[5], (N, H, W, K), f32, 1.0, 20.0)
    dists = jax.random.uniform(ks[6], (N, H, W, K), f32, -0.05, 0.05)
    texels = jax.random.uniform(ks[7], (N, H, W, K, 3), f32, 0.0, 1.0)
    vis_map = jax.random.uniform(ks[8], (N, H, W, 1), f32, 0.0, 1.0)

    # deterministic lights / camera / materials / blend params
    light_loc = jax.random.normal(ks[9], (N, 3), f32) * 3.0
    light_amb = jax.random.uniform(ks[10], (N, 3), f32, 0.2, 0.6)
    light_dif = jax.random.uniform(ks[11], (N, 3), f32, 0.3, 1.0)
    light_spc = jax.random.uniform(ks[12], (N, 3), f32, 0.1, 0.5)
    cam_pos = jax.random.normal(ks[13], (N, 3), f32) * 4.0
    mat_amb = jax.random.uniform(ks[14], (N, 3), f32, 0.5, 1.0)
    mat_dif = jax.random.uniform(ks[15], (N, 3), f32, 0.5, 1.0)
    mat_spc = jax.random.uniform(ks[16], (N, 3), f32, 0.2, 0.8)
    shininess = jnp.full((N,), 64.0, f32)
    sigma, gamma = 1e-2, 1e-1
    bg = jnp.array([1.0, 1.0, 1.0], f32)
    znear, zfar = 1.0, 100.0

    params = jnp.concatenate([
        light_loc, light_amb, light_dif, light_spc, cam_pos,
        mat_amb, mat_dif, mat_spc,
        shininess[:, None],
        jnp.full((N, 1), sigma, f32), jnp.full((N, 1), gamma, f32),
        jnp.broadcast_to(bg, (N, 3)),
        jnp.full((N, 1), znear, f32), jnp.full((N, 1), zfar, f32),
    ], axis=1)                                           # (N, 32)

    out = soft_phong_shader_shadow(verts, faces, verts_normals, pix_to_face,
                                   bary_coords, zbuf, dists, texels, vis_map, params)
    out = jax.block_until_ready(out)

    ref = _reference(verts, faces, verts_normals, pix_to_face, bary_coords, zbuf,
                     dists, texels, vis_map, light_loc, light_amb, light_dif,
                     light_spc, cam_pos, mat_amb, mat_dif, mat_spc, shininess,
                     sigma, gamma, bg, znear, zfar)

    assert out.shape == (N, H, W, 4), out.shape
    # Tolerance accounts for the bf16 texel stream and the Newton-refined approx
    # reciprocal; all blend-critical streams (prob, z_inv, av, spec_pow) are f32.
    if not jnp.allclose(out, ref, rtol=5e-3, atol=5e-3):
        raise AssertionError(
            f"kernel/reference mismatch, max abs err = {jnp.max(jnp.abs(out - ref))}")
    print("KERNEL_OK")
</pallas_src>

<mosaic_0001>
module attributes {stable_mosaic.version = 11 : i64} {
  func.func @_blend_kernel(%arg0: i32, %arg1: i32, %arg2: memref<2x13xf32, #tpu.memory_space<smem>>, %arg3: memref<1x16x2x128xf32, #tpu.memory_space<vmem>>, %arg4: memref<1x12x2x128xbf16, #tpu.memory_space<vmem>>, %arg5: memref<1x4x2x128xf32, #tpu.memory_space<vmem>>) attributes {dimension_semantics = [#tpu.dimension_semantics<parallel>, #tpu.dimension_semantics<parallel>], iteration_bounds = array<i64: 2, 1>, scalar_prefetch = 0 : i64, scratch_operands = 0 : i64, tpu.core_type = #tpu.core_type<tc>, window_params = [{transform_indices = @transform_0, window_bounds = array<i64: 2, 13>}, {transform_indices = @transform_1, window_bounds = array<i64: 1, 16, 2, 128>}, {transform_indices = @transform_2, window_bounds = array<i64: 1, 12, 2, 128>}, {transform_indices = @transform_3, window_bounds = array<i64: 1, 4, 2, 128>}]} {
    %0 = arith.index_cast %arg0 : i32 to index
    %c0 = arith.constant 0 : index
    %1 = memref.load %arg2[%0, %c0] : memref<2x13xf32, #tpu.memory_space<smem>>
    %2 = arith.index_cast %arg0 : i32 to index
    %c1 = arith.constant 1 : index
    %3 = memref.load %arg2[%2, %c1] : memref<2x13xf32, #tpu.memory_space<smem>>
    %4 = arith.index_cast %arg0 : i32 to index
    %c2 = arith.constant 2 : index
    %5 = memref.load %arg2[%4, %c2] : memref<2x13xf32, #tpu.memory_space<smem>>
    %6 = arith.index_cast %arg0 : i32 to index
    %c3 = arith.constant 3 : index
    %7 = memref.load %arg2[%6, %c3] : memref<2x13xf32, #tpu.memory_space<smem>>
    %8 = arith.index_cast %arg0 : i32 to index
    %c4 = arith.constant 4 : index
    %9 = memref.load %arg2[%8, %c4] : memref<2x13xf32, #tpu.memory_space<smem>>
    %10 = arith.index_cast %arg0 : i32 to index
    %c5 = arith.constant 5 : index
    %11 = memref.load %arg2[%10, %c5] : memref<2x13xf32, #tpu.memory_space<smem>>
    %12 = arith.index_cast %arg0 : i32 to index
    %c6 = arith.constant 6 : index
    %13 = memref.load %arg2[%12, %c6] : memref<2x13xf32, #tpu.memory_space<smem>>
    %14 = arith.index_cast %arg0 : i32 to index
    %c7 = arith.constant 7 : index
    %15 = memref.load %arg2[%14, %c7] : memref<2x13xf32, #tpu.memory_space<smem>>
    %16 = arith.index_cast %arg0 : i32 to index
    %c8 = arith.constant 8 : index
    %17 = memref.load %arg2[%16, %c8] : memref<2x13xf32, #tpu.memory_space<smem>>
    %18 = arith.index_cast %arg0 : i32 to index
    %c9 = arith.constant 9 : index
    %19 = memref.load %arg2[%18, %c9] : memref<2x13xf32, #tpu.memory_space<smem>>
    %20 = arith.index_cast %arg0 : i32 to index
    %c10 = arith.constant 10 : index
    %21 = memref.load %arg2[%20, %c10] : memref<2x13xf32, #tpu.memory_space<smem>>
    %22 = arith.index_cast %arg0 : i32 to index
    %c11 = arith.constant 11 : index
    %23 = memref.load %arg2[%22, %c11] : memref<2x13xf32, #tpu.memory_space<smem>>
    %24 = arith.index_cast %arg0 : i32 to index
    %c12 = arith.constant 12 : index
    %25 = memref.load %arg2[%24, %c12] : memref<2x13xf32, #tpu.memory_space<smem>>
    %cst = arith.constant 1.000000e+00 : f32
    %26 = arith.divf %cst, %25 : f32
    %cst_0 = arith.constant 1.000000e-10 : f32
    %27 = vector.broadcast %cst_0 : f32 to vector<2x128xf32>
    %cst_1 = arith.constant 0.000000e+00 : f32
    %28 = vector.broadcast %cst_1 : f32 to vector<2x128xf32>
    %cst_2 = arith.constant 0.000000e+00 : f32
    %29 = vector.broadcast %cst_2 : f32 to vector<2x128xf32>
    %cst_3 = arith.constant 0.000000e+00 : f32
    %30 = vector.broadcast %cst_3 : f32 to vector<2x128xf32>
    %cst_4 = arith.constant 0.000000e+00 : f32
    %31 = vector.broadcast %cst_4 : f32 to vector<2x128xf32>
    %cst_5 = arith.constant 1.000000e+00 : f32
    %32 = vector.broadcast %cst_5 : f32 to vector<2x128xf32>
    %c0_6 = arith.constant 0 : index
    %c0_7 = arith.constant 0 : index
    %c0_8 = arith.constant 0 : index
    %c0_9 = arith.constant 0 : index
    %33 = vector.load %arg3[%c0_6, %c0_7, %c0_8, %c0_9] : memref<1x16x2x128xf32, #tpu.memory_space<vmem>>, vector<1x1x2x128xf32>
    %34 = vector.shape_cast %33 : vector<1x1x2x128xf32> to vector<2x128xf32>
    %c0_10 = arith.constant 0 : index
    %c4_11 = arith.constant 4 : index
    %c0_12 = arith.constant 0 : index
    %c0_13 = arith.constant 0 : index
    %35 = vector.load %arg3[%c0_10, %c4_11, %c0_12, %c0_13] : memref<1x16x2x128xf32, #tpu.memory_space<vmem>>, vector<1x1x2x128xf32>
    %36 = vector.shape_cast %35 : vector<1x1x2x128xf32> to vector<2x128xf32>
    %c0_14 = arith.constant 0 : index
    %c8_15 = arith.constant 8 : index
    %c0_16 = arith.constant 0 : index
    %c0_17 = arith.constant 0 : index
    %37 = vector.load %arg3[%c0_14, %c8_15, %c0_16, %c0_17] : memref<1x16x2x128xf32, #tpu.memory_space<vmem>>, vector<1x1x2x128xf32>
    %38 = vector.shape_cast %37 : vector<1x1x2x128xf32> to vector<2x128xf32>
    %c0_18 = arith.constant 0 : index
    %c12_19 = arith.constant 12 : index
    %c0_20 = arith.constant 0 : index
    %c0_21 = arith.constant 0 : index
    %39 = vector.load %arg3[%c0_18, %c12_19, %c0_20, %c0_21] : memref<1x16x2x128xf32, #tpu.memory_space<vmem>>, vector<1x1x2x128xf32>
    %40 = vector.shape_cast %39 : vector<1x1x2x128xf32> to vector<2x128xf32>
    %41 = arith.maximumf %27, %40 : vector<2x128xf32>
    %42 = arith.subf %27, %41 : vector<2x128xf32>
    %43 = vector.broadcast %26 : f32 to vector<2x128xf32>
    %44 = arith.mulf %42, %43 : vector<2x128xf32>
    %45 = math.exp %44 : vector<2x128xf32>
    %46 = arith.subf %40, %41 : vector<2x128xf32>
    %47 = vector.broadcast %26 : f32 to vector<2x128xf32>
    %48 = arith.mulf %46, %47 : vector<2x128xf32>
    %49 = math.exp %48 : vector<2x128xf32>
    %50 = arith.mulf %38, %49 : vector<2x128xf32>
    %51 = arith.mulf %28, %45 : vector<2x128xf32>
    %52 = arith.addf %51, %50 : vector<2x128xf32>
    %cst_22 = arith.constant 1.000000e+00 : f32
    %53 = vector.broadcast %cst_22 : f32 to vector<2x128xf32>
    %54 = arith.subf %53, %38 : vector<2x128xf32>
    %55 = arith.mulf %32, %54 : vector<2x128xf32>
    %c0_23 = arith.constant 0 : index
    %c0_24 = arith.constant 0 : index
    %c0_25 = arith.constant 0 : index
    %c0_26 = arith.constant 0 : index
    %56 = vector.load %arg4[%c0_23, %c0_24, %c0_25, %c0_26] : memref<1x12x2x128xbf16, #tpu.memory_space<vmem>>, vector<1x1x2x128xbf16>
    %57 = vector.shape_cast %56 : vector<1x1x2x128xbf16> to vector<2x128xbf16>
    %58 = arith.extf %57 : vector<2x128xbf16> to vector<2x128xf32>
    %59 = vector.broadcast %7 : f32 to vector<2x128xf32>
    %60 = arith.mulf %59, %34 : vector<2x128xf32>
    %61 = vector.broadcast %1 : f32 to vector<2x128xf32>
    %62 = arith.addf %61, %60 : vector<2x128xf32>
    %63 = arith.mulf %62, %58 : vector<2x128xf32>
    %64 = vector.broadcast %13 : f32 to vector<2x128xf32>
    %65 = arith.mulf %64, %36 : vector<2x128xf32>
    %66 = arith.addf %63, %65 : vector<2x128xf32>
    %67 = arith.mulf %29, %45 : vector<2x128xf32>
    %68 = arith.mulf %50, %66 : vector<2x128xf32>
    %69 = arith.addf %67, %68 : vector<2x128xf32>
    %c0_27 = arith.constant 0 : index
    %c1_28 = arith.constant 1 : index
    %c0_29 = arith.constant 0 : index
    %c0_30 = arith.constant 0 : index
    %70 = vector.load %arg4[%c0_27, %c1_28, %c0_29, %c0_30] : memref<1x12x2x128xbf16, #tpu.memory_space<vmem>>, vector<1x1x2x128xbf16>
    %71 = vector.shape_cast %70 : vector<1x1x2x128xbf16> to vector<2x128xbf16>
    %72 = arith.extf %71 : vector<2x128xbf16> to vector<2x128xf32>
    %73 = vector.broadcast %9 : f32 to vector<2x128xf32>
    %74 = arith.mulf %73, %34 : vector<2x128xf32>
    %75 = vector.broadcast %3 : f32 to vector<2x128xf32>
    %76 = arith.addf %75, %74 : vector<2x128xf32>
    %77 = arith.mulf %76, %72 : vector<2x128xf32>
    %78 = vector.broadcast %15 : f32 to vector<2x128xf32>
    %79 = arith.mulf %78, %36 : vector<2x128xf32>
    %80 = arith.addf %77, %79 : vector<2x128xf32>
    %81 = arith.mulf %30, %45 : vector<2x128xf32>
    %82 = arith.mulf %50, %80 : vector<2x128xf32>
    %83 = arith.addf %81, %82 : vector<2x128xf32>
    %c0_31 = arith.constant 0 : index
    %c2_32 = arith.constant 2 : index
    %c0_33 = arith.constant 0 : index
    %c0_34 = arith.constant 0 : index
    %84 = vector.load %arg4[%c0_31, %c2_32, %c0_33, %c0_34] : memref<1x12x2x128xbf16, #tpu.memory_space<vmem>>, vector<1x1x2x128xbf16>
    %85 = vector.shape_cast %84 : vector<1x1x2x128xbf16> to vector<2x128xbf16>
    %86 = arith.extf %85 : vector<2x128xbf16> to vector<2x128xf32>
    %87 = vector.broadcast %11 : f32 to vector<2x128xf32>
    %88 = arith.mulf %87, %34 : vector<2x128xf32>
    %89 = vector.broadcast %5 : f32 to vector<2x128xf32>
    %90 = arith.addf %89, %88 : vector<2x128xf32>
    %91 = arith.mulf %90, %86 : vector<2x128xf32>
    %92 = vector.broadcast %17 : f32 to vector<2x128xf32>
    %93 = arith.mulf %92, %36 : vector<2x128xf32>
    %94 = arith.addf %91, %93 : vector<2x128xf32>
    %95 = arith.mulf %31, %45 : vector<2x128xf32>
    %96 = arith.mulf %50, %94 : vector<2x128xf32>
    %97 = arith.addf %95, %96 : vector<2x128xf32>
    %c0_35 = arith.constant 0 : index
    %c1_36 = arith.constant 1 : index
    %c0_37 = arith.constant 0 : index
    %c0_38 = arith.constant 0 : index
    %98 = vector.load %arg3[%c0_35, %c1_36, %c0_37, %c0_38] : memref<1x16x2x128xf32, #tpu.memory_space<vmem>>, vector<1x1x2x128xf32>
    %99 = vector.shape_cast %98 : vector<1x1x2x128xf32> to vector<2x128xf32>
    %c0_39 = arith.constant 0 : index
    %c5_40 = arith.constant 5 : index
    %c0_41 = arith.constant 0 : index
    %c0_42 = arith.constant 0 : index
    %100 = vector.load %arg3[%c0_39, %c5_40, %c0_41, %c0_42] : memref<1x16x2x128xf32, #tpu.memory_space<vmem>>, vector<1x1x2x128xf32>
    %101 = vector.shape_cast %100 : vector<1x1x2x128xf32> to vector<2x128xf32>
    %c0_43 = arith.constant 0 : index
    %c9_44 = arith.constant 9 : index
    %c0_45 = arith.constant 0 : index
    %c0_46 = arith.constant 0 : index
    %102 = vector.load %arg3[%c0_43, %c9_44, %c0_45, %c0_46] : memref<1x16x2x128xf32, #tpu.memory_space<vmem>>, vector<1x1x2x128xf32>
    %103 = vector.shape_cast %102 : vector<1x1x2x128xf32> to vector<2x128xf32>
    %c0_47 = arith.constant 0 : index
    %c13 = arith.constant 13 : index
    %c0_48 = arith.constant 0 : index
    %c0_49 = arith.constant 0 : index
    %104 = vector.load %arg3[%c0_47, %c13, %c0_48, %c0_49] : memref<1x16x2x128xf32, #tpu.memory_space<vmem>>, vector<1x1x2x128xf32>
    %105 = vector.shape_cast %104 : vector<1x1x2x128xf32> to vector<2x128xf32>
    %106 = arith.maximumf %41, %105 : vector<2x128xf32>
    %107 = arith.subf %41, %106 : vector<2x128xf32>
    %108 = vector.broadcast %26 : f32 to vector<2x128xf32>
    %109 = arith.mulf %107, %108 : vector<2x128xf32>
    %110 = math.exp %109 : vector<2x128xf32>
    %111 = arith.subf %105, %106 : vector<2x128xf32>
    %112 = vector.broadcast %26 : f32 to vector<2x128xf32>
    %113 = arith.mulf %111, %112 : vector<2x128xf32>
    %114 = math.exp %113 : vector<2x128xf32>
    %115 = arith.mulf %103, %114 : vector<2x128xf32>
    %116 = arith.mulf %52, %110 : vector<2x128xf32>
    %117 = arith.addf %116, %115 : vector<2x128xf32>
    %cst_50 = arith.constant 1.000000e+00 : f32
    %118 = vector.broadcast %cst_50 : f32 to vector<2x128xf32>
    %119 = arith.subf %118, %103 : vector<2x128xf32>
    %120 = arith.mulf %55, %119 : vector<2x128xf32>
    %c0_51 = arith.constant 0 : index
    %c3_52 = arith.constant 3 : index
    %c0_53 = arith.constant 0 : index
    %c0_54 = arith.constant 0 : index
    %121 = vector.load %arg4[%c0_51, %c3_52, %c0_53, %c0_54] : memref<1x12x2x128xbf16, #tpu.memory_space<vmem>>, vector<1x1x2x128xbf16>
    %122 = vector.shape_cast %121 : vector<1x1x2x128xbf16> to vector<2x128xbf16>
    %123 = arith.extf %122 : vector<2x128xbf16> to vector<2x128xf32>
    %124 = vector.broadcast %7 : f32 to vector<2x128xf32>
    %125 = arith.mulf %124, %99 : vector<2x128xf32>
    %126 = vector.broadcast %1 : f32 to vector<2x128xf32>
    %127 = arith.addf %126, %125 : vector<2x128xf32>
    %128 = arith.mulf %127, %123 : vector<2x128xf32>
    %129 = vector.broadcast %13 : f32 to vector<2x128xf32>
    %130 = arith.mulf %129, %101 : vector<2x128xf32>
    %131 = arith.addf %128, %130 : vector<2x128xf32>
    %132 = arith.mulf %69, %110 : vector<2x128xf32>
    %133 = arith.mulf %115, %131 : vector<2x128xf32>
    %134 = arith.addf %132, %133 : vector<2x128xf32>
    %c0_55 = arith.constant 0 : index
    %c4_56 = arith.constant 4 : index
    %c0_57 = arith.constant 0 : index
    %c0_58 = arith.constant 0 : index
    %135 = vector.load %arg4[%c0_55, %c4_56, %c0_57, %c0_58] : memref<1x12x2x128xbf16, #tpu.memory_space<vmem>>, vector<1x1x2x128xbf16>
    %136 = vector.shape_cast %135 : vector<1x1x2x128xbf16> to vector<2x128xbf16>
    %137 = arith.extf %136 : vector<2x128xbf16> to vector<2x128xf32>
    %138 = vector.broadcast %9 : f32 to vector<2x128xf32>
    %139 = arith.mulf %138, %99 : vector<2x128xf32>
    %140 = vector.broadcast %3 : f32 to vector<2x128xf32>
    %141 = arith.addf %140, %139 : vector<2x128xf32>
    %142 = arith.mulf %141, %137 : vector<2x128xf32>
    %143 = vector.broadcast %15 : f32 to vector<2x128xf32>
    %144 = arith.mulf %143, %101 : vector<2x128xf32>
    %145 = arith.addf %142, %144 : vector<2x128xf32>
    %146 = arith.mulf %83, %110 : vector<2x128xf32>
    %147 = arith.mulf %115, %145 : vector<2x128xf32>
    %148 = arith.addf %146, %147 : vector<2x128xf32>
    %c0_59 = arith.constant 0 : index
    %c5_60 = arith.constant 5 : index
    %c0_61 = arith.constant 0 : index
    %c0_62 = arith.constant 0 : index
    %149 = vector.load %arg4[%c0_59, %c5_60, %c0_61, %c0_62] : memref<1x12x2x128xbf16, #tpu.memory_space<vmem>>, vector<1x1x2x128xbf16>
    %150 = vector.shape_cast %149 : vector<1x1x2x128xbf16> to vector<2x128xbf16>
    %151 = arith.extf %150 : vector<2x128xbf16> to vector<2x128xf32>
    %152 = vector.broadcast %11 : f32 to vector<2x128xf32>
    %153 = arith.mulf %152, %99 : vector<2x128xf32>
    %154 = vector.broadcast %5 : f32 to vector<2x128xf32>
    %155 = arith.addf %154, %153 : vector<2x128xf32>
    %156 = arith.mulf %155, %151 : vector<2x128xf32>
    %157 = vector.broadcast %17 : f32 to vector<2x128xf32>
    %158 = arith.mulf %157, %101 : vector<2x128xf32>
    %159 = arith.addf %156, %158 : vector<2x128xf32>
    %160 = arith.mulf %97, %110 : vector<2x128xf32>
    %161 = arith.mulf %115, %159 : vector<2x128xf32>
    %162 = arith.addf %160, %161 : vector<2x128xf32>
    %c0_63 = arith.constant 0 : index
    %c2_64 = arith.constant 2 : index
    %c0_65 = arith.constant 0 : index
    %c0_66 = arith.constant 0 : index
    %163 = vector.load %arg3[%c0_63, %c2_64, %c0_65, %c0_66] : memref<1x16x2x128xf32, #tpu.memory_space<vmem>>, vector<1x1x2x128xf32>
    %164 = vector.shape_cast %163 : vector<1x1x2x128xf32> to vector<2x128xf32>
    %c0_67 = arith.constant 0 : index
    %c6_68 = arith.constant 6 : index
    %c0_69 = arith.constant 0 : index
    %c0_70 = arith.constant 0 : index
    %165 = vector.load %arg3[%c0_67, %c6_68, %c0_69, %c0_70] : memref<1x16x2x128xf32, #tpu.memory_space<vmem>>, vector<1x1x2x128xf32>
    %166 = vector.shape_cast %165 : vector<1x1x2x128xf32> to vector<2x128xf32>
    %c0_71 = arith.constant 0 : index
    %c10_72 = arith.constant 10 : index
    %c0_73 = arith.constant 0 : index
    %c0_74 = arith.constant 0 : index
    %167 = vector.load %arg3[%c0_71, %c10_72, %c0_73, %c0_74] : memref<1x16x2x128xf32, #tpu.memory_space<vmem>>, vector<1x1x2x128xf32>
    %168 = vector.shape_cast %167 : vector<1x1x2x128xf32> to vector<2x128xf32>
    %c0_75 = arith.constant 0 : index
    %c14 = arith.constant 14 : index
    %c0_76 = arith.constant 0 : index
    %c0_77 = arith.constant 0 : index
    %169 = vector.load %arg3[%c0_75, %c14, %c0_76, %c0_77] : memref<1x16x2x128xf32, #tpu.memory_space<vmem>>, vector<1x1x2x128xf32>
    %170 = vector.shape_cast %169 : vector<1x1x2x128xf32> to vector<2x128xf32>
    %171 = arith.maximumf %106, %170 : vector<2x128xf32>
    %172 = arith.subf %106, %171 : vector<2x128xf32>
    %173 = vector.broadcast %26 : f32 to vector<2x128xf32>
    %174 = arith.mulf %172, %173 : vector<2x128xf32>
    %175 = math.exp %174 : vector<2x128xf32>
    %176 = arith.subf %170, %171 : vector<2x128xf32>
    %177 = vector.broadcast %26 : f32 to vector<2x128xf32>
    %178 = arith.mulf %176, %177 : vector<2x128xf32>
    %179 = math.exp %178 : vector<2x128xf32>
    %180 = arith.mulf %168, %179 : vector<2x128xf32>
    %181 = arith.mulf %117, %175 : vector<2x128xf32>
    %182 = arith.addf %181, %180 : vector<2x128xf32>
    %cst_78 = arith.constant 1.000000e+00 : f32
    %183 = vector.broadcast %cst_78 : f32 to vector<2x128xf32>
    %184 = arith.subf %183, %168 : vector<2x128xf32>
    %185 = arith.mulf %120, %184 : vector<2x128xf32>
    %c0_79 = arith.constant 0 : index
    %c6_80 = arith.constant 6 : index
    %c0_81 = arith.constant 0 : index
    %c0_82 = arith.constant 0 : index
    %186 = vector.load %arg4[%c0_79, %c6_80, %c0_81, %c0_82] : memref<1x12x2x128xbf16, #tpu.memory_space<vmem>>, vector<1x1x2x128xbf16>
    %187 = vector.shape_cast %186 : vector<1x1x2x128xbf16> to vector<2x128xbf16>
    %188 = arith.extf %187 : vector<2x128xbf16> to vector<2x128xf32>
    %189 = vector.broadcast %7 : f32 to vector<2x128xf32>
    %190 = arith.mulf %189, %164 : vector<2x128xf32>
    %191 = vector.broadcast %1 : f32 to vector<2x128xf32>
    %192 = arith.addf %191, %190 : vector<2x128xf32>
    %193 = arith.mulf %192, %188 : vector<2x128xf32>
    %194 = vector.broadcast %13 : f32 to vector<2x128xf32>
    %195 = arith.mulf %194, %166 : vector<2x128xf32>
    %196 = arith.addf %193, %195 : vector<2x128xf32>
    %197 = arith.mulf %134, %175 : vector<2x128xf32>
    %198 = arith.mulf %180, %196 : vector<2x128xf32>
    %199 = arith.addf %197, %198 : vector<2x128xf32>
    %c0_83 = arith.constant 0 : index
    %c7_84 = arith.constant 7 : index
    %c0_85 = arith.constant 0 : index
    %c0_86 = arith.constant 0 : index
    %200 = vector.load %arg4[%c0_83, %c7_84, %c0_85, %c0_86] : memref<1x12x2x128xbf16, #tpu.memory_space<vmem>>, vector<1x1x2x128xbf16>
    %201 = vector.shape_cast %200 : vector<1x1x2x128xbf16> to vector<2x128xbf16>
    %202 = arith.extf %201 : vector<2x128xbf16> to vector<2x128xf32>
    %203 = vector.broadcast %9 : f32 to vector<2x128xf32>
    %204 = arith.mulf %203, %164 : vector<2x128xf32>
    %205 = vector.broadcast %3 : f32 to vector<2x128xf32>
    %206 = arith.addf %205, %204 : vector<2x128xf32>
    %207 = arith.mulf %206, %202 : vector<2x128xf32>
    %208 = vector.broadcast %15 : f32 to vector<2x128xf32>
    %209 = arith.mulf %208, %166 : vector<2x128xf32>
    %210 = arith.addf %207, %209 : vector<2x128xf32>
    %211 = arith.mulf %148, %175 : vector<2x128xf32>
    %212 = arith.mulf %180, %210 : vector<2x128xf32>
    %213 = arith.addf %211, %212 : vector<2x128xf32>
    %c0_87 = arith.constant 0 : index
    %c8_88 = arith.constant 8 : index
    %c0_89 = arith.constant 0 : index
    %c0_90 = arith.constant 0 : index
    %214 = vector.load %arg4[%c0_87, %c8_88, %c0_89, %c0_90] : memref<1x12x2x128xbf16, #tpu.memory_space<vmem>>, vector<1x1x2x128xbf16>
    %215 = vector.shape_cast %214 : vector<1x1x2x128xbf16> to vector<2x128xbf16>
    %216 = arith.extf %215 : vector<2x128xbf16> to vector<2x128xf32>
    %217 = vector.broadcast %11 : f32 to vector<2x128xf32>
    %218 = arith.mulf %217, %164 : vector<2x128xf32>
    %219 = vector.broadcast %5 : f32 to vector<2x128xf32>
    %220 = arith.addf %219, %218 : vector<2x128xf32>
    %221 = arith.mulf %220, %216 : vector<2x128xf32>
    %222 = vector.broadcast %17 : f32 to vector<2x128xf32>
    %223 = arith.mulf %222, %166 : vector<2x128xf32>
    %224 = arith.addf %221, %223 : vector<2x128xf32>
    %225 = arith.mulf %162, %175 : vector<2x128xf32>
    %226 = arith.mulf %180, %224 : vector<2x128xf32>
    %227 = arith.addf %225, %226 : vector<2x128xf32>
    %c0_91 = arith.constant 0 : index
    %c3_92 = arith.constant 3 : index
    %c0_93 = arith.constant 0 : index
    %c0_94 = arith.constant 0 : index
    %228 = vector.load %arg3[%c0_91, %c3_92, %c0_93, %c0_94] : memref<1x16x2x128xf32, #tpu.memory_space<vmem>>, vector<1x1x2x128xf32>
    %229 = vector.shape_cast %228 : vector<1x1x2x128xf32> to vector<2x128xf32>
    %c0_95 = arith.constant 0 : index
    %c7_96 = arith.constant 7 : index
    %c0_97 = arith.constant 0 : index
    %c0_98 = arith.constant 0 : index
    %230 = vector.load %arg3[%c0_95, %c7_96, %c0_97, %c0_98] : memref<1x16x2x128xf32, #tpu.memory_space<vmem>>, vector<1x1x2x128xf32>
    %231 = vector.shape_cast %230 : vector<1x1x2x128xf32> to vector<2x128xf32>
    %c0_99 = arith.constant 0 : index
    %c11_100 = arith.constant 11 : index
    %c0_101 = arith.constant 0 : index
    %c0_102 = arith.constant 0 : index
    %232 = vector.load %arg3[%c0_99, %c11_100, %c0_101, %c0_102] : memref<1x16x2x128xf32, #tpu.memory_space<vmem>>, vector<1x1x2x128xf32>
    %233 = vector.shape_cast %232 : vector<1x1x2x128xf32> to vector<2x128xf32>
    %c0_103 = arith.constant 0 : index
    %c15 = arith.constant 15 : index
    %c0_104 = arith.constant 0 : index
    %c0_105 = arith.constant 0 : index
    %234 = vector.load %arg3[%c0_103, %c15, %c0_104, %c0_105] : memref<1x16x2x128xf32, #tpu.memory_space<vmem>>, vector<1x1x2x128xf32>
    %235 = vector.shape_cast %234 : vector<1x1x2x128xf32> to vector<2x128xf32>
    %236 = arith.maximumf %171, %235 : vector<2x128xf32>
    %237 = arith.subf %171, %236 : vector<2x128xf32>
    %238 = vector.broadcast %26 : f32 to vector<2x128xf32>
    %239 = arith.mulf %237, %238 : vector<2x128xf32>
    %240 = math.exp %239 : vector<2x128xf32>
    %241 = arith.subf %235, %236 : vector<2x128xf32>
    %242 = vector.broadcast %26 : f32 to vector<2x128xf32>
    %243 = arith.mulf %241, %242 : vector<2x128xf32>
    %244 = math.exp %243 : vector<2x128xf32>
    %245 = arith.mulf %233, %244 : vector<2x128xf32>
    %246 = arith.mulf %182, %240 : vector<2x128xf32>
    %247 = arith.addf %246, %245 : vector<2x128xf32>
    %cst_106 = arith.constant 1.000000e+00 : f32
    %248 = vector.broadcast %cst_106 : f32 to vector<2x128xf32>
    %249 = arith.subf %248, %233 : vector<2x128xf32>
    %250 = arith.mulf %185, %249 : vector<2x128xf32>
    %c0_107 = arith.constant 0 : index
    %c9_108 = arith.constant 9 : index
    %c0_109 = arith.constant 0 : index
    %c0_110 = arith.constant 0 : index
    %251 = vector.load %arg4[%c0_107, %c9_108, %c0_109, %c0_110] : memref<1x12x2x128xbf16, #tpu.memory_space<vmem>>, vector<1x1x2x128xbf16>
    %252 = vector.shape_cast %251 : vector<1x1x2x128xbf16> to vector<2x128xbf16>
    %253 = arith.extf %252 : vector<2x128xbf16> to vector<2x128xf32>
    %254 = vector.broadcast %7 : f32 to vector<2x128xf32>
    %255 = arith.mulf %254, %229 : vector<2x128xf32>
    %256 = vector.broadcast %1 : f32 to vector<2x128xf32>
    %257 = arith.addf %256, %255 : vector<2x128xf32>
    %258 = arith.mulf %257, %253 : vector<2x128xf32>
    %259 = vector.broadcast %13 : f32 to vector<2x128xf32>
    %260 = arith.mulf %259, %231 : vector<2x128xf32>
    %261 = arith.addf %258, %260 : vector<2x128xf32>
    %262 = arith.mulf %199, %240 : vector<2x128xf32>
    %263 = arith.mulf %245, %261 : vector<2x128xf32>
    %264 = arith.addf %262, %263 : vector<2x128xf32>
    %c0_111 = arith.constant 0 : index
    %c10_112 = arith.constant 10 : index
    %c0_113 = arith.constant 0 : index
    %c0_114 = arith.constant 0 : index
    %265 = vector.load %arg4[%c0_111, %c10_112, %c0_113, %c0_114] : memref<1x12x2x128xbf16, #tpu.memory_space<vmem>>, vector<1x1x2x128xbf16>
    %266 = vector.shape_cast %265 : vector<1x1x2x128xbf16> to vector<2x128xbf16>
    %267 = arith.extf %266 : vector<2x128xbf16> to vector<2x128xf32>
    %268 = vector.broadcast %9 : f32 to vector<2x128xf32>
    %269 = arith.mulf %268, %229 : vector<2x128xf32>
    %270 = vector.broadcast %3 : f32 to vector<2x128xf32>
    %271 = arith.addf %270, %269 : vector<2x128xf32>
    %272 = arith.mulf %271, %267 : vector<2x128xf32>
    %273 = vector.broadcast %15 : f32 to vector<2x128xf32>
    %274 = arith.mulf %273, %231 : vector<2x128xf32>
    %275 = arith.addf %272, %274 : vector<2x128xf32>
    %276 = arith.mulf %213, %240 : vector<2x128xf32>
    %277 = arith.mulf %245, %275 : vector<2x128xf32>
    %278 = arith.addf %276, %277 : vector<2x128xf32>
    %c0_115 = arith.constant 0 : index
    %c11_116 = arith.constant 11 : index
    %c0_117 = arith.constant 0 : index
    %c0_118 = arith.constant 0 : index
    %279 = vector.load %arg4[%c0_115, %c11_116, %c0_117, %c0_118] : memref<1x12x2x128xbf16, #tpu.memory_space<vmem>>, vector<1x1x2x128xbf16>
    %280 = vector.shape_cast %279 : vector<1x1x2x128xbf16> to vector<2x128xbf16>
    %281 = arith.extf %280 : vector<2x128xbf16> to vector<2x128xf32>
    %282 = vector.broadcast %11 : f32 to vector<2x128xf32>
    %283 = arith.mulf %282, %229 : vector<2x128xf32>
    %284 = vector.broadcast %5 : f32 to vector<2x128xf32>
    %285 = arith.addf %284, %283 : vector<2x128xf32>
    %286 = arith.mulf %285, %281 : vector<2x128xf32>
    %287 = vector.broadcast %17 : f32 to vector<2x128xf32>
    %288 = arith.mulf %287, %231 : vector<2x128xf32>
    %289 = arith.addf %286, %288 : vector<2x128xf32>
    %290 = arith.mulf %227, %240 : vector<2x128xf32>
    %291 = arith.mulf %245, %289 : vector<2x128xf32>
    %292 = arith.addf %290, %291 : vector<2x128xf32>
    %cst_119 = arith.constant 1.000000e-10 : f32
    %293 = vector.broadcast %cst_119 : f32 to vector<2x128xf32>
    %294 = arith.subf %293, %236 : vector<2x128xf32>
    %295 = vector.broadcast %26 : f32 to vector<2x128xf32>
    %296 = arith.mulf %294, %295 : vector<2x128xf32>
    %297 = math.exp %296 : vector<2x128xf32>
    %cst_120 = arith.constant 1.000000e-10 : f32
    %298 = vector.broadcast %cst_120 : f32 to vector<2x128xf32>
    %299 = arith.maximumf %297, %298 : vector<2x128xf32>
    %300 = arith.addf %247, %299 : vector<2x128xf32>
    %301 = tpu.reciprocal %300 {approx = true} : vector<2x128xf32> -> vector<2x128xf32>
    %302 = arith.mulf %300, %301 : vector<2x128xf32>
    %cst_121 = arith.constant 2.000000e+00 : f32
    %303 = vector.broadcast %cst_121 : f32 to vector<2x128xf32>
    %304 = arith.subf %303, %302 : vector<2x128xf32>
    %305 = arith.mulf %301, %304 : vector<2x128xf32>
    %306 = vector.broadcast %19 : f32 to vector<2x128xf32>
    %307 = arith.mulf %299, %306 : vector<2x128xf32>
    %308 = arith.addf %264, %307 : vector<2x128xf32>
    %309 = arith.mulf %308, %305 : vector<2x128xf32>
    %c0_122 = arith.constant 0 : index
    %c0_123 = arith.constant 0 : index
    %c0_124 = arith.constant 0 : index
    %c0_125 = arith.constant 0 : index
    %310 = vector.load %arg5[%c0_122, %c0_123, %c0_124, %c0_125] : memref<1x4x2x128xf32, #tpu.memory_space<vmem>>, vector<1x1x2x128xf32>
    %311 = vector.shape_cast %310 : vector<1x1x2x128xf32> to vector<2x128xf32>
    %312 = vector.shape_cast %309 : vector<2x128xf32> to vector<1x1x2x128xf32>
    tpu.vector_store %arg5[%c0_122, %c0_123, %c0_124, %c0_125], %312 {strides = array<i32>} : memref<1x4x2x128xf32, #tpu.memory_space<vmem>>, vector<1x1x2x128xf32>,
    %313 = vector.broadcast %21 : f32 to vector<2x128xf32>
    %314 = arith.mulf %299, %313 : vector<2x128xf32>
    %315 = arith.addf %278, %314 : vector<2x128xf32>
    %316 = arith.mulf %315, %305 : vector<2x128xf32>
    %c0_126 = arith.constant 0 : index
    %c1_127 = arith.constant 1 : index
    %c0_128 = arith.constant 0 : index
    %c0_129 = arith.constant 0 : index
    %317 = vector.load %arg5[%c0_126, %c1_127, %c0_128, %c0_129] : memref<1x4x2x128xf32, #tpu.memory_space<vmem>>, vector<1x1x2x128xf32>
    %318 = vector.shape_cast %317 : vector<1x1x2x128xf32> to vector<2x128xf32>
    %319 = vector.shape_cast %316 : vector<2x128xf32> to vector<1x1x2x128xf32>
    tpu.vector_store %arg5[%c0_126, %c1_127, %c0_128, %c0_129], %319 {strides = array<i32>} : memref<1x4x2x128xf32, #tpu.memory_space<vmem>>, vector<1x1x2x128xf32>,
    %320 = vector.broadcast %23 : f32 to vector<2x128xf32>
    %321 = arith.mulf %299, %320 : vector<2x128xf32>
    %322 = arith.addf %292, %321 : vector<2x128xf32>
    %323 = arith.mulf %322, %305 : vector<2x128xf32>
    %c0_130 = arith.constant 0 : index
    %c2_131 = arith.constant 2 : index
    %c0_132 = arith.constant 0 : index
    %c0_133 = arith.constant 0 : index
    %324 = vector.load %arg5[%c0_130, %c2_131, %c0_132, %c0_133] : memref<1x4x2x128xf32, #tpu.memory_space<vmem>>, vector<1x1x2x128xf32>
    %325 = vector.shape_cast %324 : vector<1x1x2x128xf32> to vector<2x128xf32>
    %326 = vector.shape_cast %323 : vector<2x128xf32> to vector<1x1x2x128xf32>
    tpu.vector_store %arg5[%c0_130, %c2_131, %c0_132, %c0_133], %326 {strides = array<i32>} : memref<1x4x2x128xf32, #tpu.memory_space<vmem>>, vector<1x1x2x128xf32>,
    %cst_134 = arith.constant 1.000000e+00 : f32
    %327 = vector.broadcast %cst_134 : f32 to vector<2x128xf32>
    %328 = arith.subf %327, %250 : vector<2x128xf32>
    %c0_135 = arith.constant 0 : index
    %c3_136 = arith.constant 3 : index
    %c0_137 = arith.constant 0 : index
    %c0_138 = arith.constant 0 : index
    %329 = vector.load %arg5[%c0_135, %c3_136, %c0_137, %c0_138] : memref<1x4x2x128xf32, #tpu.memory_space<vmem>>, vector<1x1x2x128xf32>
    %330 = vector.shape_cast %329 : vector<1x1x2x128xf32> to vector<2x128xf32>
    %331 = vector.shape_cast %328 : vector<2x128xf32> to vector<1x1x2x128xf32>
    tpu.vector_store %arg5[%c0_135, %c3_136, %c0_137, %c0_138], %331 {strides = array<i32>} : memref<1x4x2x128xf32, #tpu.memory_space<vmem>>, vector<1x1x2x128xf32>,
    return
  }
  func.func @transform_0(%arg0: i32, %arg1: i32) -> (i32, i32) {
    %c0_i32 = arith.constant 0 : i32
    %c0_i32_0 = arith.constant 0 : i32
    %c0_i32_1 = arith.constant 0 : i32
    return %c0_i32, %c0_i32_0 : i32, i32
  }
  func.func @transform_1(%arg0: i32, %arg1: i32) -> (i32, i32, i32, i32) {
    %c0_i32 = arith.constant 0 : i32
    %c0_i32_0 = arith.constant 0 : i32
    %c0_i32_1 = arith.constant 0 : i32
    return %arg0, %c0_i32, %arg1, %c0_i32_0 : i32, i32, i32, i32
  }
  func.func @transform_2(%arg0: i32, %arg1: i32) -> (i32, i32, i32, i32) {
    %c0_i32 = arith.constant 0 : i32
    %c0_i32_0 = arith.constant 0 : i32
    %c0_i32_1 = arith.constant 0 : i32
    return %arg0, %c0_i32, %arg1, %c0_i32_0 : i32, i32, i32, i32
  }
  func.func @transform_3(%arg0: i32, %arg1: i32) -> (i32, i32, i32, i32) {
    %c0_i32 = arith.constant 0 : i32
    %c0_i32_0 = arith.constant 0 : i32
    %c0_i32_1 = arith.constant 0 : i32
    return %arg0, %c0_i32, %arg1, %c0_i32_0 : i32, i32, i32, i32
  }
}

</mosaic_0001>

<bundles_post_ra>
// kernel: tpu_custom_call.1
= control target key start
LH: loop header
LB: loop body
LE: loop exit
PB: predicated region body
PF: predicated region fallthrough
CT: control target
= control target key end

     0   :  { %s1416_s0 = inlined_call_operand.hbm [shape: f32[2,13], index: 0, kind: input, shape index: {}]   ;;  %s1417_s1 = inlined_call_operand.hbm [shape: f32[2,16,2,128], index: 1, kind: input, shape index: {}]   ;;  %s1418_s2 = inlined_call_operand.hbm [shape: bf16[2,12,2,128], index: 2, kind: input, shape index: {}]   ;;  %s1419_s3 = inlined_call_operand.hbm [shape: f32[2,4,2,128], index: 3, kind: output, shape index: {}]  }
   0x1   :  { %1423 = sst [smem:[#allocation16_spill]] %s1416_s0 }
   0x2   :  { %1424 = sst [smem:[#allocation17_spill]] %s1417_s1 }
   0x3   :  { %8 = vsyncpa [#allocation5], 0 }
   0x4   :  { %9 = vsyncpa [#allocation3], 0 }
   0x5   :  { %11 = vsyncpa [#allocation3 + $0x1], 0 }
   0x6   :  { %12 = vsyncpa [#allocation8], 0 }
   0x7   :  { %14 = vsyncpa [#allocation8 + $0x1], 0 }
   0x8   :  { %15 = vsyncpa [#allocation4], 0 }
   0x9   :  { %17 = vsyncpa [#allocation4 + $0x1], 0  ;;  %s1054_s12 = smov 0   ;;  %s1056_s13 = smov 0  }
   0xa   :  { %s1058_s14 = smov 0   ;;  %s1060_s15 = smov 0  }
   0xb   :  { %s1062_s16 = smov 0   ;;  %s1064_s17 = smov 0  }
   0xc LB: > { %1425 = sst [smem:[#allocation14_spill]] %s1025_s17  ;;  %s700_s18 = sadd.s32 4294967295, %s1025_s17   ;;  %s1025_s17 = sphi %s1064_s17, %s23_s17   ;;  %s1021_s16 = sphi %s1062_s16, %s1442_s16   ;;  %s1017_s15 = sphi %s1060_s15, %s1441_s15   ;;  %s1013_s14 = sphi %s1058_s14, %s1440_s14   ;;  %s1009_s13 = sphi %s1056_s13, %s1439_s13   ;;  %s1005_s12 = sphi %s1054_s12, %s1438_s12  }
   0xd   : > { %s701_s19 = sadd.s32 4294967294, %s1025_s17   ;;  %s65_s20 = sadd.s32 1, %s1013_s14 }
   0xe   : > { %p72_p0 = scmp.ne.s32.totalorder %s1013_s14, %s1009_s13  ;;  %p73_p1 = scmp.eq.s32.totalorder %s1025_s17, 0 }
   0xf   : > { %p78_p2 = scmp.ne.s32.totalorder %s1009_s13, %s1005_s12  ;;  %p1092_p3 = scmp.eq.s32.totalorder %s700_s18, 0 }
  0x10   : > { %p132_p4 = scmp.eq.s32.totalorder %s700_s18, 1  ;;  %p1096_p5 = por %p73_p1, %p72_p0 }
  0x11   : > { %p138_p6 = scmp.eq.s32.totalorder %s701_s19, 1  ;;  %p1102_p7 = por %p1092_p3, %p78_p2 }
  0x12   : > { %p1106_p8 = por %p132_p4, %p72_p0  ;;  %p702_p10 = scmp.ge.s32.totalorder %s1025_s17, 1 }
  0x13   : > { %p1110_p9 = por %p138_p6, %p78_p2  ;;  %p145_p11 = scmp.lt.s32.totalorder %s1025_s17, 3 }
  0x14   : > { %s1431_s0 = sld [smem:[#allocation16_spill]]  ;;  %p704_p13 = scmp.ge.s32.totalorder %s1025_s17, 2 }
  0x15   : > { %p1119_p12 = pnand %p702_p10, %p145_p11  ;;  %p780_p0 = scmp.lt.s32.totalorder %s1025_s17, 2 }
  0x16   : > { %s35_s4 = sadd.s32 1, %s1021_s16  ;;  %s1137_s5 = sand.u32 1, %s1013_s14  }
  0x17   : > { %p764_p1 = pneg %p1119_p12  ;;  %p1129_p2 = pnand %p780_p0, %p1096_p5 }
  0x18   : > { %p37_p6 = scmp.ge.s32.totalorder %s35_s4, 2  ;;  %s1027_s6 = smov [#allocation2]  }
  0x19   : > { %p765_p4 = pnand %p764_p1, %p1092_p3  ;;  %s705_s7 = sshll.u32 %s1137_s5, 5 }
  0x1a   : > { %s157_s28 = sshll.u32 %s1431_s0, 4  ;;  %s1444_s4 = smov (%p37_p6, %s35_s4), 0  ;;  %s158_s28 = int_to_ptr.hbm [resolvable:$true] %s157_s28 }
  0x1b   : > { %767 = dma.hbm_to_smem (!%p765_p4), %s158_s28, 32, %s1027_s6, [#allocation5]  }
  0x1c   : > { %1434 = sst [smem:[#allocation15_spill]] %s1444_s4  ;;  %s60_s8 = ssub.s32 %s1021_s16, %s1444_s4 }
  0x1d   : > { %p63_p5 = scmp.eq.s32.totalorder %s60_s8, 0  ;;  %s747_s9 = sshll.u32 %s1021_s16, 5 }
  0x1e   : > { %s1435_s1 = sld [smem:[#allocation17_spill]]  ;;  %s172_s19 = scalar_lea.vmem [#allocation6], %s705_s7 }
  0x1f   : > { %s181_s22 = sshll.u32 %s172_s19, 4  ;;  %s169_s28 = scalar_lea.sflag [#allocation3], %s1137_s5  ;;  %s182_s22 = int_to_ptr.vmem [resolvable:$true] %s181_s22 }
  0x20   : > { %s1151_s26 = scalar_select %p63_p5, %s1013_s14, %s65_s20  }
  0x21   : > { %s1028_s6 = smov 32   ;;  %s1029_s0 = smov 2  }
  0x22   : > { %s749_s8 = smul.u32 12, %s1137_s5  ;;  %s1030_s19 = smov 16  }
  0x23   : > { %s750_s4 = smul.u32 12, %s1021_s16 }
  0x24   : > { %s178_s18 = scalar_lea.hbm %s1435_s1, %s747_s9  ;;  %s195_s9 = scalar_lea.vmem [#allocation7], %s749_s8 }
  0x25   : > { %s179_s27 = sshll.u32 %s178_s18, 4  ;;  %s200_s7 = scalar_lea.hbm %s1418_s2, %s750_s4  ;;  %s180_s27 = int_to_ptr.hbm [resolvable:$true] %s179_s27 }
  0x26   : > { %771 = dma.hbm_to_vmem [thread:$0]  (!%p1129_p2), %s180_s27, 512, %s182_s22, %s169_s28, %s1028_s6, %s1028_s6, %s1029_s0  }
  0x27   : > { %s203_s11 = sshll.u32 %s195_s9, 4  ;;  %s201_s20 = sshll.u32 %s200_s7, 4  ;;  %s204_s11 = int_to_ptr.vmem [resolvable:$true] %s203_s11  ;;  %s202_s20 = int_to_ptr.hbm [resolvable:$true] %s201_s20 }
  0x28   : > { %s192_s18 = scalar_lea.sflag [#allocation8], %s1137_s5  ;;  %s1031_s1 = smov 1  }
  0x29   : > { %774 = dma.hbm_to_vmem [thread:$0]  (!%p1129_p2), %s202_s20, 192, %s204_s11, %s192_s18, %s1030_s19, %s1030_s19, %s1031_s1  }
  0x2a   : > { %215 = sbr.rel (%p1119_p12) target bundleno = 186 (0xba), region = 32 }
  0x2f   : > { %988 = dma.done.wait (%p1092_p3), [#allocation5], 32  }
  0x30   : > { %990 = vsyncadd (%p1092_p3), [#allocation5], 4294967264  ;;  %s1171_s0 = sand.u32 1, %s1009_s13  }
  0x31   : > { %s710_s17 = sshll.u32 %s1171_s0, 5  ;;  %s223_s4 = scalar_lea.sflag [#allocation3], %s1171_s0 }
  0x32   : > { %s1175_s5 = scalar_lea.vmem [#allocation6], %s710_s17 }
  0x33   : > { %992 = dma.done.wait (%p1102_p7), %s223_s4, 512  }
  0x34   : > { %994 = vsyncadd (%p1102_p7), %s223_s4, 4294966784  ;;  %s751_s1 = smul.u32 12, %s1171_s0  ;;  %s233_s21 = scalar_lea.sflag [#allocation8], %s1171_s0 }
  0x36   : > { %s1183_s29 = scalar_lea.vmem [#allocation7], %s751_s1 }
  0x37   : > { %996 = dma.done.wait (%p1102_p7), %s233_s21, 192  }
  0x38   : > { %998 = vsyncadd (%p1102_p7), %s233_s21, 4294967104 }
  0x39   : > { %242 = sfence }
  0x3a   : > { %s1190_s30 = sshll.u32 %s1017_s15, 7  ;;  %v1198_v11 = vld [vmem:[%s1175_s5 + $0x18] sm:$0x3]  ;;  %v1208_v13 = vld [vmem:[%s1175_s5 + $0x1a] sm:$0x3] }
  0x3b   : > { %s290_s22 = sadd.s32 12, %s1190_s30  ;;  %s272_s23 = sadd.s32 3, %s1190_s30  ;;  %v1204_v12 = vmax.f32 %v1198_v11, 1e-10  ;;  %v308_v14 = vld [vmem:[%s1175_s5] sm:$0x3] }
  0x3c   : > { %s291_s27 = sld [smem:[#allocation2 + %s290_s22]]  ;;  %s274_s28 = sadd.s32 4, %s1190_s30  ;;  %v1222_v19 = vld [vmem:[%s1175_s5 + $0x1c] sm:$0x3]  ;;  %v329_v20 = vld [vmem:[%s1183_s29] sm:$0x1] }
  0x3d   : > { %s273_s6 = sld [smem:[#allocation2 + %s272_s23]]  ;;  %s276_s10 = sadd.s32 5, %s1190_s30  ;;  %v1218_v17 = vmax.f32 %v1204_v12, %v1208_v13  ;;  %v716_v24 = vld [vmem:[%s1183_s29 + $0x1] sm:$0x1]  ;;  %v330_v27 = vunpack.c.l.bf16 %v329_v20  ;;  %v1239_v29 = vld [vmem:[%s1175_s5 + $0x1e] sm:$0x3]  ;;  %v321_v40 = vsub.f32 %v1198_v11, %v1204_v12 }
  0x3e   : > { %s275_s8 = sld [smem:[#allocation2 + %s274_s28]]  ;;  %s268_s7 = sadd.s32 1, %s1190_s30  ;;  %v713_v30 = vld [vmem:[%s1175_s5 + $0x8] sm:$0x3]  ;;  %v343_v33 = vunpack.c.l.bf16 %v716_v24  ;;  %v717_v35 = vld [vmem:[%s1183_s29 + $0x2] sm:$0x1] }
  0x3f   : > { %s267_s9 = sld [smem:[#allocation2 + %s1190_s30]]  ;;  %s278_s20 = sadd.s32 6, %s1190_s30  ;;  %v1235_v26 = vmax.f32 %v1218_v17, %v1222_v19  ;;  %v718_v37 = vld [vmem:[%s1175_s5 + $0x2] sm:$0x3]  ;;  %v316_v43 = vsub.f32 1e-10, %v1204_v12  ;;  %v356_v44 = vunpack.c.l.bf16 %v717_v35  ;;  %v376_v51 = vsub.f32 %v1204_v12, %v1218_v17 }
  0x40   : > { %s277_s11 = sld [smem:[#allocation2 + %s276_s10]]  ;;  %s270_s19 = sadd.s32 2, %s1190_s30  ;;  %v722_v46 = vld [vmem:[%s1183_s29 + $0x3] sm:$0x1]  ;;  %v380_v52 = vsub.f32 %v1208_v13, %v1218_v17  ;;  %v723_v53 = vld [vmem:[%s1183_s29 + $0x4] sm:$0x1] }
  0x41   : > { %s269_s18 = sld [smem:[#allocation2 + %s268_s7]]  ;;  %s280_s17 = sadd.s32 7, %s1190_s30  ;;  %v1254_v39 = vmax.f32 %v1235_v26, %v1239_v29  ;;  %v431_v54 = vsub.f32 %v1218_v17, %v1235_v26  ;;  %v435_v55 = vsub.f32 %v1222_v19, %v1235_v26  ;;  %v719_v58 = vld [vmem:[%s1175_s5 + $0xa] sm:$0x3]  ;;  %v391_v59 = vunpack.c.l.bf16 %v722_v46  ;;  %v1284_v62 = vld [vmem:[%s1175_s5 + $0x10] sm:$0x3] }
  0x42   : > { %v292_v0 = vstv %s291_s27  ;;  %s279_s4 = sld [smem:[#allocation2 + %s278_s20]]  ;;  %s282_s22 = sadd.s32 8, %s1190_s30  ;;  %v725_v19 = vld [vmem:[%s1175_s5 + $0x4] sm:$0x3] }
  0x43   : > { %838 = vrcp.f32 %v292_v0  ;;  %v304_v3 = vand.u32 2147483648, %v292_v0  ;;  %vm298_vm0 = vweird.f32 %v292_v0  ;;  %v302_v5 = vand.u32 2147483647, %v292_v0  ;;  %s271_s1 = sld [smem:[#allocation2 + %s270_s19]]  ;;  %s711_s28 = sshll.u32 %s1171_s0, 3 }
  0x44   : > { %v1211_v15 = vstv %s273_s6  ;;  %s281_s21 = sld [smem:[#allocation2 + %s280_s17]]  ;;  %v1214_v16 = vstv %s275_s8  ;;  %v486_v56 = vsub.f32 %v1235_v26, %v1254_v39  ;;  %v490_v60 = vsub.f32 %v1239_v29, %v1254_v39  ;;  %v729_v29 = vld [vmem:[%s1183_s29 + $0x6] sm:$0x1]  ;;  %s1347_s6 = scalar_lea.vmem [#allocation9], %s711_s28 }
  0x45   : > { %v305_v7 = vor.u32 1.1754944e-38, %v304_v3  ;;  %vm303_vm3 = vcmp.eq.f32.partialorder %v302_v5, 8.507059e+37  ;;  %v332_v18 = vmul.f32 %v1211_v15, %v308_v14  ;;  %v1225_v21 = vstv %s267_s9  ;;  %s283_s27 = sld [smem:[#allocation2 + %s282_s22]]  ;;  %s284_s8 = sadd.s32 9, %s1190_s30 }
  0x46   : > { %v345_v22 = vmul.f32 %v1214_v16, %v308_v14  ;;  %v1228_v23 = vstv %s277_s11  ;;  %v392_v47 = vmul.f32 %v718_v37, %v1211_v15  ;;  %v532_v61 = vsub.f32 1e-10, %v1254_v39  ;;  %s1367_s10 = sld [smem:[#allocation2 + %s284_s8]]  ;;  %s563_s17 = scalar_lea.sflag [#allocation4], %s1171_s0 }
  0x47   : > { %v1231_v25 = vstv %s269_s18  ;;  %v334_v28 = vadd.f32 %v1225_v21, %v332_v18  ;;  %v358_v32 = vmul.f32 %v1228_v23, %v308_v14  ;;  %v403_v3 = vmul.f32 %v718_v37, %v1214_v16 }
  0x48   : > { %v1242_v31 = vstv %s279_s4  ;;  %v347_v34 = vadd.f32 %v1231_v25, %v345_v22  ;;  %v328_v5 = vsub.f32 1.0, %v1284_v62  ;;  %v414_v12 = vmul.f32 %v718_v37, %v1228_v23 }
  0x49   : > { %v839_v1 = vpop.eup %838  ;;  %v1247_v36 = vstv %s271_s1  ;;  %v335_v41 = vmul.f32 %v334_v28, %v330_v27  ;;  %v337_v42 = vmul.f32 %v713_v30, %v1242_v31  ;;  %v404_v26 = vadd.f32 %v403_v3, %v1231_v25  ;;  %v726_v27 = vld [vmem:[%s1175_s5 + $0xc] sm:$0x3]  ;;  %v1306_v28 = vld [vmem:[%s1175_s5 + $0x14] sm:$0x3] }
  0x4a   : > { %v294_v2 = vmul.f32 %v839_v1, %v292_v0  ;;  %vm299_vm1 = vweird.f32 %v839_v1  ;;  %v1250_v38 = vstv %s281_s21  ;;  %v360_v45 = vadd.f32 %v1247_v36, %v358_v32 }
  0x4b   : > { %vm300_vm2 = vmor %vm298_vm0, %vm299_vm1  ;;  %v348_v48 = vmul.f32 %v347_v34, %v343_v33  ;;  %v350_v49 = vmul.f32 %v713_v30, %v1250_v38  ;;  %v1264_v50 = vstv %s283_s27  ;;  %v1277_v57 = vadd.f32 %v337_v42, %v335_v41  ;;  %s955_s27 = scalar_lea.hbm %s1419_s3, 16 }
  0x4c   : > { %v295_v4 = vsub.f32 1.0, %v294_v2  ;;  %v361_v63 = vmul.f32 %v360_v45, %v356_v44  ;;  %v363_v0 = vmul.f32 %v713_v30, %v1264_v50  ;;  %v393_v2 = vadd.f32 %v392_v47, %v1225_v21  ;;  %v730_v47 = vld [vmem:[%s1183_s29 + $0x7] sm:$0x1] }
  0x4d   : > { %v406_v11 = vmul.f32 %v719_v58, %v1250_v38  ;;  %v442_v34 = vsub.f32 1.0, %v1306_v28  ;;  %v415_v37 = vadd.f32 %v414_v12, %v1247_v36  ;;  %v447_v44 = vmul.f32 %v725_v19, %v1211_v15 }
  0x4e   : > { %v296_v6 = vmul.f32 %v839_v1, %v295_v4  ;;  %v724_v4 = vld [vmem:[%s1183_s29 + $0x5] sm:$0x1]  ;;  %v1301_v20 = vadd.f32 %v363_v0, %v361_v63  ;;  %v394_v24 = vmul.f32 %v393_v2, %v391_v59  ;;  %v1314_v46 = vmul.f32 %v726_v27, %v1242_v31 }
  0x4f   : > { %v413_v18 = vunpack.c.l.bf16 %v724_v4  ;;  %v448_v3 = vadd.f32 %v447_v44, %v1225_v21  ;;  %v469_v4 = vmul.f32 %v725_v19, %v1228_v23 }
  0x50   : > { %v297_v8 = vadd.f32 %v839_v1, %v296_v6  ;;  %v1294_v6 = vadd.f32 %v350_v49, %v348_v48 }
  0x51   : > { %v416_v0 = vmul.f32 %v415_v37, %v413_v18 }
  0x52   : > { %v301_v9 = vsel %vm300_vm2, %v839_v1, %v297_v8  ;;  %v1288_v1 = vld [vmem:[%s1175_s5 + $0x12] sm:$0x3]  ;;  %v402_v8 = vunpack.c.l.bf16 %v723_v53  ;;  %v458_v53 = vmul.f32 %v725_v19, %v1214_v16 }
  0x53   : > { %v306_v10 = vsel %vm303_vm3, %v305_v7, %v301_v9  ;;  %v387_v7 = vsub.f32 1.0, %v1288_v1 }
  0x54   : > { %752 = vpush %v306_v10  ;;  %v395_v10 = vmul.f32 %v719_v58, %v1242_v31  ;;  %v459_v12 = vadd.f32 %v458_v53, %v1231_v25 }
  0x55   : > { %v388_v33 = vmul.f32 %v387_v7, %v328_v5 }
  0x56   : > { %v1317_v49 = vadd.f32 %v395_v10, %v394_v24 }
  0x85   : > { %s753_s23 = spop %752 }
  0x86   : > { %v317_v9 = vstv %s753_s23 }
  0x87   : > { %v318_v13 = vmul.f32 %v317_v9, %v316_v43  ;;  %v322_v14 = vmul.f32 %v321_v40, %v317_v9  ;;  %v381_v17 = vmul.f32 %v380_v52, %v317_v9  ;;  %v377_v22 = vmul.f32 %v376_v51, %v317_v9 }
  0x88   : > { %v417_v40 = vmul.f32 %v719_v58, %v1264_v50  ;;  %v436_v41 = vmul.f32 %v435_v55, %v317_v9  ;;  %v432_v42 = vmul.f32 %v431_v54, %v317_v9  ;;  %v446_v43 = vunpack.c.l.bf16 %v729_v29  ;;  %v1321_v55 = vld [vmem:[%s1175_s5 + $0x16] sm:$0x3]  ;;  %v731_v58 = vld [vmem:[%s1183_s29 + $0x8] sm:$0x1] }
  0x89   : > { %v319_v30 = vmul.f32 1.442695, %v318_v13  ;;  %v323_v32 = vmul.f32 1.442695, %v322_v14  ;;  %v382_v35 = vmul.f32 1.442695, %v381_v17  ;;  %v487_v48 = vmul.f32 %v486_v56, %v317_v9 }
  0x8a   : > { %v378_v45 = vmul.f32 1.442695, %v377_v22  ;;  %v405_v51 = vmul.f32 %v404_v26, %v402_v8  ;;  %v443_v52 = vmul.f32 %v442_v34, %v388_v33  ;;  %v437_v54 = vmul.f32 1.442695, %v436_v41  ;;  %v732_v34 = vld [vmem:[%s1175_s5 + $0x6] sm:$0x3] }
  0x8b   : > { %840 = vpow2.f32 %v319_v30  ;;  %v491_v59 = vmul.f32 %v490_v60, %v317_v9  ;;  %v497_v63 = vsub.f32 1.0, %v1321_v55  ;;  %v433_v2 = vmul.f32 1.442695, %v432_v42 }
  0x8c   : > { %842 = vpow2.f32 %v323_v32  ;;  %v457_v56 = vunpack.c.l.bf16 %v730_v47  ;;  %v488_v5 = vmul.f32 1.442695, %v487_v48  ;;  %v533_v7 = vmul.f32 %v532_v61, %v317_v9 }
  0x8d   : > { %844 = vpow2.f32 %v382_v35  ;;  %v407_v10 = vadd.f32 %v406_v11, %v405_v51  ;;  %v1331_v60 = vmul.f32 %v726_v27, %v1250_v38  ;;  %v468_v13 = vunpack.c.l.bf16 %v731_v58 }
  0x8e   : > { %846 = vpow2.f32 %v378_v45  ;;  %v492_v18 = vmul.f32 1.442695, %v491_v59  ;;  %v498_v22 = vmul.f32 %v497_v63, %v443_v52  ;;  %v418_v24 = vadd.f32 %v417_v40, %v416_v0  ;;  %v737_v59 = vld [vmem:[%s1183_s29 + $0xa] sm:$0x1] }
  0x8f   : > { %848 = vpow2.f32 %v437_v54  ;;  %v449_v39 = vmul.f32 %v448_v3, %v446_v43  ;;  %v470_v9 = vadd.f32 %v469_v4, %v1247_v36  ;;  %v472_v11 = vmul.f32 %v726_v27, %v1264_v50  ;;  %v738_v3 = vld [vmem:[%s1183_s29 + $0xb] sm:$0x1] }
  0x90   : > { %850 = vpow2.f32 %v433_v2  ;;  %v534_v26 = vmul.f32 1.442695, %v533_v7  ;;  %v460_v37 = vmul.f32 %v459_v12, %v457_v56  ;;  %v559_v40 = vsub.f32 1.0, %v498_v22 }
  0x91   : > { %v841_v8 = vpop.eup %840  ;;  %852 = vpow2.f32 %v488_v5  ;;  %v471_v45 = vmul.f32 %v470_v9, %v468_v13  ;;  %v512_v13 = vunpack.c.l.bf16 %v737_v59 }
  0x92   : > { %v843_v14 = vpop.eup %842  ;;  %v326_v17 = vmul.f32 0.0, %v841_v8  ;;  %854 = vpow2.f32 %v492_v18  ;;  %741 = vst [vmem:[%s1347_s6 + $0x6] sm:$0x3] %v559_v40  ;;  %v733_v8 = vld [vmem:[%s1175_s5 + $0xe] sm:$0x3]  ;;  %v523_v18 = vunpack.c.l.bf16 %v738_v3  ;;  %s288_s5 = sadd.s32 11, %s1190_s30 }
  0x93   : > { %v325_v19 = vmul.f32 %v843_v14, %v1284_v62  ;;  %v845_v61 = vpop.eup %844  ;;  %856 = vpow2.f32 %v534_v26  ;;  %v527_v26 = vmul.f32 %v733_v8, %v1264_v50  ;;  %s289_s9 = sld [smem:[#allocation2 + %s288_s5]] }
  0x94   : > { %v847_v62 = vpop.eup %846  ;;  %v384_v35 = vmul.f32 %v845_v61, %v1288_v1  ;;  %v516_v61 = vmul.f32 %v733_v8, %v1250_v38 }
  0x95   : > { %v327_v29 = vadd.f32 %v326_v17, %v325_v19  ;;  %v339_v30 = vmul.f32 %v1277_v57, %v325_v19  ;;  %v352_v32 = vmul.f32 %v1294_v6, %v325_v19  ;;  %v365_v33 = vmul.f32 %v1301_v20, %v325_v19  ;;  %v849_v44 = vpop.eup %848  ;;  %v736_v57 = vld [vmem:[%s1183_s29 + $0x9] sm:$0x1]  ;;  %s286_s29 = sadd.s32 10, %s1190_s30  ;;  %s748_s30 = sshll.u32 %s1017_s15, 3 }
  0x96   : > { %v502_v6 = vmul.f32 %v732_v34, %v1211_v15  ;;  %v513_v20 = vmul.f32 %v732_v34, %v1214_v16  ;;  %v851_v1 = vpop.eup %850  ;;  %v398_v54 = vmul.f32 %v1317_v49, %v384_v35  ;;  %v409_v58 = vmul.f32 %v407_v10, %v384_v35  ;;  %s1370_s7 = sld [smem:[#allocation2 + %s286_s29]]  ;;  %s575_s18 = scalar_lea.hbm %s1419_s3, %s748_s30 }
  0x97   : > { %v340_v41 = vadd.f32 %v339_v30, %v326_v17  ;;  %v353_v27 = vadd.f32 %v352_v32, %v326_v17  ;;  %v366_v42 = vadd.f32 %v365_v33, %v326_v17  ;;  %v385_v43 = vmul.f32 %v847_v62, %v327_v29  ;;  %v853_v53 = vpop.eup %852  ;;  %s576_s15 = sshll.u32 %s1347_s6, 4  ;;  %s578_s19 = sshll.u32 %s575_s18, 4  ;;  %s577_s15 = int_to_ptr.vmem [resolvable:$true] %s576_s15  ;;  %s579_s19 = int_to_ptr.hbm [resolvable:$true] %s578_s19 }
  0x98   : > { %v420_v15 = vmul.f32 %v418_v24, %v384_v35  ;;  %v524_v16 = vmul.f32 %v732_v34, %v1228_v23  ;;  %v439_v63 = vmul.f32 %v849_v44, %v1306_v28  ;;  %v501_v2 = vunpack.c.l.bf16 %v736_v57  ;;  %v855_v56 = vpop.eup %854  ;;  %s949_s4 = sshra.s32 %s579_s19, 4  ;;  %s950_s4 = int_to_ptr.hbm [resolvable:$true] %s949_s4 }
  0x99   : > { %v386_v47 = vadd.f32 %v385_v43, %v384_v35  ;;  %v397_v48 = vmul.f32 %v847_v62, %v340_v41  ;;  %v408_v51 = vmul.f32 %v847_v62, %v353_v27  ;;  %v419_v52 = vmul.f32 %v847_v62, %v366_v42  ;;  %v857_v14 = vpop.eup %856  ;;  %s951_s1 = scalar_lea.hbm %s950_s4, 8  ;;  %p956_p11 = scmp.lt.s32.totalorder %s950_s4, %s1419_s3 }
  0x9a   : > { %v503_v12 = vadd.f32 %v502_v6, %v1225_v21  ;;  %v451_v10 = vadd.f32 %v1314_v46, %v449_v39  ;;  %v514_v23 = vadd.f32 %v513_v20, %v1231_v25  ;;  %v462_v28 = vadd.f32 %v1331_v60, %v460_v37  ;;  %p952_p3 = scmp.ne.s32.totalorder %s950_s4, %s951_s1  ;;  %p957_p12 = scmp.lt.s32.totalorder %s955_s27, %s951_s1 }
  0x9b   : > { %v440_v0 = vmul.f32 %v851_v1, %v386_v47  ;;  %v399_v4 = vadd.f32 %v398_v54, %v397_v48  ;;  %v410_v5 = vadd.f32 %v409_v58, %v408_v51  ;;  %v421_v7 = vadd.f32 %v420_v15, %v419_v52 }
  0x9c   : > { %v473_v17 = vadd.f32 %v472_v11, %v471_v45  ;;  %v525_v22 = vadd.f32 %v524_v16, %v1247_v36  ;;  %v494_v19 = vmul.f32 %v855_v56, %v1321_v55  ;;  %v505_v21 = vmul.f32 %v733_v8, %v1242_v31  ;;  %p953_p7 = pnand %p952_p3, %p1106_p8  ;;  %p958_p0 = por %p957_p12, %p956_p11 }
  0x9d   : > { %v441_v49 = vadd.f32 %v440_v0, %v439_v63  ;;  %v452_v46 = vmul.f32 %v851_v1, %v399_v4  ;;  %v463_v39 = vmul.f32 %v851_v1, %v410_v5  ;;  %v474_v25 = vmul.f32 %v851_v1, %v421_v7 }
  0x9e   : > { %v504_v9 = vmul.f32 %v503_v12, %v501_v2  ;;  %v515_v11 = vmul.f32 %v514_v23, %v512_v13  ;;  %v536_v36 = vmax.f32 %v857_v14, 1e-10  ;;  %v453_v55 = vmul.f32 %v451_v10, %v439_v63  ;;  %p954_p10 = pneg %p953_p7 }
  0x9f   : > { %v495_v24 = vmul.f32 %v853_v53, %v441_v49  ;;  %v464_v29 = vmul.f32 %v462_v28, %v439_v63  ;;  %v475_v30 = vmul.f32 %v473_v17, %v439_v63  ;;  %v526_v31 = vmul.f32 %v525_v22, %v523_v18 }
  0xa0   : > { %v454_v32 = vadd.f32 %v453_v55, %v452_v46  ;;  %v506_v62 = vadd.f32 %v505_v21, %v504_v9  ;;  %v517_v35 = vadd.f32 %v516_v61, %v515_v11  ;;  %v542_v45 = vstv %s1367_s10  ;;  %p959_p1 = pnand %p958_p0, %p954_p10 }
  0xa1   : > { %v496_v60 = vadd.f32 %v495_v24, %v494_v19  ;;  %v465_v33 = vadd.f32 %v464_v29, %v463_v39  ;;  %v476_v34 = vadd.f32 %v475_v30, %v474_v25  ;;  %v528_v37 = vadd.f32 %v527_v26, %v526_v31 }
  0xa2   : > { %v507_v50 = vmul.f32 %v853_v53, %v454_v32  ;;  %v508_v27 = vmul.f32 %v506_v62, %v494_v19  ;;  %v519_v42 = vmul.f32 %v517_v35, %v494_v19  ;;  %v547_v57 = vstv %s1370_s7 }
  0xa3   : > { %v537_v38 = vadd.f32 %v536_v36, %v496_v60  ;;  %v518_v40 = vmul.f32 %v853_v53, %v465_v33  ;;  %v529_v41 = vmul.f32 %v853_v53, %v476_v34  ;;  %v530_v43 = vmul.f32 %v528_v37, %v494_v19 }
  0xa4   : > { %v553_v6 = vstv %s289_s9  ;;  %v509_v20 = vadd.f32 %v508_v27, %v507_v50  ;;  %v543_v52 = vmul.f32 %v542_v45, %v536_v36  ;;  %v548_v53 = vmul.f32 %v547_v57, %v536_v36 }
  0xa5   : > { %858 = vrcp.f32 %v537_v38  ;;  %v520_v1 = vadd.f32 %v519_v42, %v518_v40  ;;  %v531_v47 = vadd.f32 %v530_v43, %v529_v41  ;;  %v554_v54 = vmul.f32 %v553_v6, %v536_v36 }
  0xa6   : > { %v544_v15 = vadd.f32 %v543_v52, %v509_v20 }
  0xa7   : > { %v549_v59 = vadd.f32 %v548_v53, %v520_v1  ;;  %v555_v16 = vadd.f32 %v554_v54, %v531_v47 }
  0xab   : > { %v859_v44 = vpop.eup %858 }
  0xac   : > { %v539_v48 = vmul.f32 %v859_v44, %v537_v38 }
  0xae   : > { %v540_v51 = vsub.f32 2.0, %v539_v48 }
  0xb0   : > { %v541_v58 = vmul.f32 %v859_v44, %v540_v51 }
  0xb2   : > { %v545_v63 = vmul.f32 %v544_v15, %v541_v58  ;;  %v550_v0 = vmul.f32 %v549_v59, %v541_v58  ;;  %v556_v2 = vmul.f32 %v555_v16, %v541_v58 }
  0xb4   : > { %546 = vst [vmem:[%s1347_s6] sm:$0x3] %v545_v63 }
  0xb5   : > { %739 = vst [vmem:[%s1347_s6 + $0x2] sm:$0x3] %v550_v0 }
  0xb6   : > { %740 = vst [vmem:[%s1347_s6 + $0x4] sm:$0x3] %v556_v2 }
  0xb7   : > { %962 = shalt.err (!%p959_p1)
}
  0xb8   : > { %s1032_s0 = smov 32   ;;  %s1033_s6 = smov 2  }
  0xb9   : > { %762 = dma.vmem_to_hbm [thread:$0]  (%p1106_p8), %s577_s15, 128, %s579_s19, %s563_s17, %s1032_s0, %s1032_s0, %s1033_s6  }
  0xba PF: > { %s1436_s8 = sld [smem:[#allocation14_spill]]  ;;  %s593_s29 = sand.u32 1, %s1005_s12  }
  0xbb   : > { %p776_p2 = pnand %p704_p13, %p1110_p9  ;;  %s594_s5 = scalar_lea.sflag [#allocation4], %s593_s29 }
  0xbd   : > { %p777_p4 = pneg %p776_p2 }
  0xbf   : > { %1000 = dma.done.wait (%p777_p4), %s594_s5, 128  }
  0xc0   : > { %1002 = vsyncadd (%p777_p4), %s594_s5, 4294967168  ;;  %s23_s17 = sadd.s32 1, %s1436_s8   ;;  %s1437_s24 = sld [smem:[#allocation15_spill]] }
  0xc1   : > { %p20_p6 = scmp.ge.s32.totalorder %s23_s17, 4   ;;  %s1438_s12 = smov %s1009_s13 }
  0xc2   : > { %s1439_s13 = smov %s1013_s14  ;;  %s1440_s14 = smov %s1151_s26 }
  0xc3   : > { %s1441_s15 = smov %s1021_s16  ;;  %22 = sbr.rel (!%p20_p6) target bundleno = 12 (0xc), region = 124 }
  0xc6   : > { %s1442_s16 = smov %s1437_s24 }
  0xc8   :  { %600 = vsyncpa [#allocation3], 1 }
  0xc9   :  { %602 = vsyncpa [#allocation3 + $0x1], 1 }
  0xca   :  { %603 = vsyncpa [#allocation8], 1 }
  0xcb   :  { %605 = vsyncpa [#allocation8 + $0x1], 1 }
  0xcc   :  { %606 = vsyncpa [#allocation4], 1 }
  0xcd   :  { %608 = vsyncpa [#allocation4 + $0x1], 1 }
  0xce   :  { %609 = vsyncpa [#allocation5], 1 }
  0xcf   :  { %611 = vsyncpa [#allocation5 + $0x1], 1 }

</bundles_post_ra>
